<compile_context>
chip_gen: v6e
topology: v6e:2x2x1
jax: 0.10.0
libtpu: 0.0.40
codegen_flags: <defaults>
</compile_context>

<pallas_src>
import functools
import math

import jax
import jax.numpy as jnp
from jax import lax
from jax.experimental import pallas as pl
from jax.experimental.pallas import tpu as pltpu


_MASK_NEG = -1e30  # large finite negative; avoids (-inf) - (-inf) = NaN in softmax


def _sdpa_kernel(*refs, apply_softmax, scale, has_mask, return_attn, use_bf16):
    refs = list(refs)
    q_ref = refs.pop(0)
    k_ref = refs.pop(0)
    v_ref = refs.pop(0)
    mask_ref = refs.pop(0) if has_mask else None
    out_ref = refs.pop(0)
    attn_ref = refs.pop(0) if return_attn else None

    # Fold 1/sqrt(Dk) into q: scales Tq*Dk elements instead of Tq*Lk scores.
    q = q_ref[...] * jnp.asarray(scale, dtype=q_ref.dtype)        # (Bb, Tq, Dk)
    k = k_ref[...]                                                # (Bb, Lk, Dk)
    if use_bf16 and q.dtype == jnp.float32:
        q = q.astype(jnp.bfloat16)
        k = k.astype(jnp.bfloat16)

    # Batched Q @ K^T, contracting the feature dim in K's native layout
    # (no explicit transpose / XLU shuffles). f32 accumulation on the MXU.
    scores = lax.dot_general(
        q, k,
        dimension_numbers=(((2,), (2,)), ((0,), (0,))),
        preferred_element_type=jnp.float32,
    )                                                              # (Bb, Tq, Lk)

    if has_mask:
        scores = jnp.where(mask_ref[...] != 0, jnp.float32(_MASK_NEG), scores)

    if apply_softmax:
        m = jnp.max(scores, axis=-1, keepdims=True)
        p = jnp.exp(scores - m)
        denom = jnp.sum(p, axis=-1, keepdims=True)
        # approx reciprocal on the otherwise-idle EUP slot + one Newton step so the
        # *stored* attention rows sum to ~1 exactly (review correctness concern).
        r = pl.reciprocal(denom, approx=True)
        r = r * (2.0 - denom * r)
        p = p * r
    else:
        # PyTorch branch for Lk == 1: torch.ones_like(attn) (left unnormalized).
        p = jnp.ones_like(scores)

    v = v_ref[...]
    pv_dtype = jnp.bfloat16 if (use_bf16 and v.dtype == jnp.float32) else v.dtype
    p_lp = p.astype(pv_dtype)        # single downcast, reused for attn store + PV dot

    if return_attn:
        if attn_ref.dtype == p_lp.dtype:
            attn_ref[...] = p_lp
        else:
            attn_ref[...] = p.astype(attn_ref.dtype)

    # Second matmul: probabilities in v's (possibly bf16) dtype, f32 accumulate.
    out_ref[...] = lax.dot_general(
        p_lp, v.astype(pv_dtype),
        dimension_numbers=(((2,), (1,)), ((0,), (0,))),
        preferred_element_type=jnp.float32,
    ).astype(out_ref.dtype)


def _vmem_capacity_bytes():
    """Physical VMEM of the current TPU generation; conservative fallback = 64 MiB (v7x)."""
    try:
        info = pltpu.get_tpu_info()
        cap = getattr(info, "vmem_capacity_bytes", None)
        if cap:
            return int(cap)
    except Exception:
        pass
    return 64 * 1024 * 1024


def _pick_q_tile(Lq, max_tile=256):
    """Full Lq when small (block == full dim is always legal); otherwise a fixed
    MXU-aligned tile with a cdiv grid and a padded tail block."""
    if Lq <= max_tile:
        return Lq
    return max_tile


def _largest_batch_divisor(B, per_batch_bytes, budget_bytes):
    """Largest divisor of B whose pipelined tile footprint fits the budget."""
    best = 1
    for bb in range(1, B + 1):
        if B % bb == 0 and bb * per_batch_bytes <= budget_bytes:
            best = bb
    return best


def scaled_dot_product_attention(q, k, v, attn_mask=None, *,
                                 return_attn=True,
                                 attn_dtype=None,
                                 use_bf16_matmul=False):
    """Pallas implementation of ScaledDotProductAttention.forward (eval mode).

    return_attn=False drops the (B, Lq, Lk) attention writeback (biggest HBM win).
    attn_dtype lets callers store attn in bf16 when f32 precision is not needed.
    use_bf16_matmul casts f32 operands to bf16 for the MXU fast path (f32 accumulate).
    """
    B, Lq, Dk = q.shape
    Bk, Lk, Dk2 = k.shape
    Bv, Lv, Dv = v.shape
    assert B == Bk == Bv and Dk == Dk2 and Lk == Lv

    has_mask = attn_mask is not None
    if has_mask:
        assert attn_mask.shape == (B, Lq, Lk), (
            f"Attention mask shape {attn_mask.shape} mismatch with "
            f"Attention logit tensor shape {(B, Lq, Lk)}."
        )
        mask = attn_mask.astype(jnp.int8)   # 1 byte/elem instead of int32/bool32

    apply_softmax = Lk > 1                  # matches `if attn.size()[2] > 1`
    scale = 1.0 / math.sqrt(Dk)
    attn_dtype = q.dtype if attn_dtype is None else jnp.dtype(attn_dtype)

    itemsize = jnp.dtype(q.dtype).itemsize
    Tq = _pick_q_tile(Lq)
    n_q = pl.cdiv(Lq, Tq)

    # --- VMEM accounting -----------------------------------------------------
    # Double-buffered tiles (inputs + outputs) plus the live f32 temporaries
    # inside the body (scores / exp / normalized p ~ 3x, plus the f32 PV result).
    tiles_bytes = (Tq * Dk + Lk * (Dk + Dv) + Tq * Dv) * itemsize
    if has_mask:
        tiles_bytes += Tq * Lk                                  # int8 mask tile
    if return_attn:
        tiles_bytes += Tq * Lk * jnp.dtype(attn_dtype).itemsize
    live_bytes = 3 * Tq * Lk * 4 + Tq * Dv * 4
    per_batch_bytes = 2 * tiles_bytes + live_bytes

    vmem_cap = _vmem_capacity_bytes()          # 128 MiB v5e/v6e, 64 MiB per-TC v7x
    tile_budget = int(vmem_cap * 0.40)         # ~51 MiB on v5e/v6e, ~25 MiB on v7x
    Bb = _largest_batch_divisor(B, per_batch_bytes, tile_budget)

    grid = (B // Bb, n_q)

    in_specs = [
        pl.BlockSpec((Bb, Tq, Dk), lambda b, qi: (b, qi, 0)),
        # K/V only change on the outer (slow) b axis, so their re-DMA is rare.
        pl.BlockSpec((Bb, Lk, Dk), lambda b, qi: (b, 0, 0)),
        pl.BlockSpec((Bb, Lk, Dv), lambda b, qi: (b, 0, 0)),
    ]
    inputs = [q, k, v]
    if has_mask:
        in_specs.append(pl.BlockSpec((Bb, Tq, Lk), lambda b, qi: (b, qi, 0)))
        inputs.append(mask)

    out_shape = [jax.ShapeDtypeStruct((B, Lq, Dv), q.dtype)]
    out_specs = [pl.BlockSpec((Bb, Tq, Dv), lambda b, qi: (b, qi, 0))]
    if return_attn:
        out_shape.append(jax.ShapeDtypeStruct((B, Lq, Lk), attn_dtype))
        out_specs.append(pl.BlockSpec((Bb, Tq, Lk), lambda b, qi: (b, qi, 0)))

    # vmem_limit: sized to the actual footprint with headroom, capped at ~85% of the
    # generation's physical VMEM (leaves compiler internal-scratch headroom on v7x).
    vmem_limit = int(min(int(vmem_cap * 0.85),
                         max(32 * 1024 * 1024,
                             int(1.5 * Bb * per_batch_bytes) + (8 << 20))))

    kernel = functools.partial(
        _sdpa_kernel, apply_softmax=apply_softmax, scale=scale,
        has_mask=has_mask, return_attn=return_attn, use_bf16=use_bf16_matmul)

    results = pl.pallas_call(
        kernel,
        out_shape=tuple(out_shape),
        grid_spec=pltpu.PrefetchScalarGridSpec(
            num_scalar_prefetch=0,
            grid=grid,
            in_specs=in_specs,
            out_specs=out_specs,
        ),
        compiler_params=pltpu.CompilerParams(
            # batch axis 'parallel': on v7x the two TensorCores split on b, so the
            # identical K/V blocks are not DMA'd twice; qi stays pipelined.
            dimension_semantics=("parallel", "arbitrary"),
            vmem_limit_bytes=vmem_limit,
        ),
    )(*inputs)

    if return_attn:
        out, attn = results
        return out, attn
    return results[0], None


def _reference(q, k, v, attn_mask=None):
    d_k = k.shape[-1]
    scores = jnp.einsum("bqd,bkd->bqk", q, k) / math.sqrt(d_k)
    if attn_mask is not None:
        scores = jnp.where(attn_mask, -jnp.inf, scores)
    if scores.shape[2] > 1:
        attn = jax.nn.softmax(scores, axis=-1)
    else:
        attn = jnp.ones_like(scores)
    return jnp.einsum("bqk,bkd->bqd", attn, v), attn


if __name__ == "__main__":
    key = jax.random.PRNGKey(0)
    kq, kk, kv = jax.random.split(key, 3)

    B, Lq, Lk, Dk, Dv = 2, 8, 8, 32, 32
    q = jax.random.normal(kq, (B, Lq, Dk), dtype=jnp.float32)
    k = jax.random.normal(kk, (B, Lk, Dk), dtype=jnp.float32)
    v = jax.random.normal(kv, (B, Lk, Dv), dtype=jnp.float32)

    TOL = dict(atol=1e-2, rtol=1e-2)

    # --- no-mask path ---
    out, attn = scaled_dot_product_attention(q, k, v)
    jax.block_until_ready((out, attn))
    ref_out, ref_attn = _reference(q, k, v)
    assert jnp.allclose(out, ref_out, **TOL), "output mismatch (no mask)"
    assert jnp.allclose(attn, ref_attn, **TOL), "attn mismatch (no mask)"

    # --- masked path (mask travels as int8, no fully-masked rows) ---
    row = jnp.arange(Lq)[:, None]
    col = jnp.arange(Lk)[None, :]
    causal_mask = jnp.broadcast_to(col > row, (B, Lq, Lk))   # True == masked
    out_m, attn_m = scaled_dot_product_attention(q, k, v, attn_mask=causal_mask)
    jax.block_until_ready((out_m, attn_m))
    ref_out_m, ref_attn_m = _reference(q, k, v, attn_mask=causal_mask)
    assert jnp.allclose(out_m, ref_out_m, **TOL), "output mismatch (masked)"
    assert jnp.allclose(attn_m, ref_attn_m, **TOL), "attn mismatch (masked)"

    # --- fast path: no attn writeback ---
    out_f, attn_none = scaled_dot_product_attention(q, k, v, return_attn=False)
    jax.block_until_ready(out_f)
    assert attn_none is None
    assert jnp.allclose(out_f, ref_out, **TOL), "output mismatch (return_attn=False)"

    # --- bf16-MXU path (f32 inputs cast to bf16 for the dots, f32 accumulate) ---
    out_b, attn_b = scaled_dot_product_attention(q, k, v, use_bf16_matmul=True)
    jax.block_until_ready((out_b, attn_b))
    assert jnp.allclose(out_b, ref_out, atol=5e-2, rtol=5e-2), "output mismatch (bf16)"
    assert jnp.allclose(attn_b, ref_attn, atol=5e-2, rtol=5e-2), "attn mismatch (bf16)"

    print("KERNEL_OK")
</pallas_src>

<mosaic_0001>
module attributes {stable_mosaic.version = 11 : i64} {
  func.func @_sdpa_kernel(%arg0: i32, %arg1: i32, %arg2: memref<2x8x32xf32, #tpu.memory_space<vmem>>, %arg3: memref<2x8x32xf32, #tpu.memory_space<vmem>>, %arg4: memref<2x8x32xf32, #tpu.memory_space<vmem>>, %arg5: memref<2x8x32xf32, #tpu.memory_space<vmem>>, %arg6: memref<2x8x8xf32, #tpu.memory_space<vmem>>) attributes {dimension_semantics = [#tpu.dimension_semantics<parallel>, #tpu.dimension_semantics<arbitrary>], iteration_bounds = array<i64: 1, 1>, scalar_prefetch = 0 : i64, scratch_operands = 0 : i64, tpu.core_type = #tpu.core_type<tc>, window_params = [{transform_indices = @transform_0, window_bounds = array<i64: 2, 8, 32>}, {transform_indices = @transform_1, window_bounds = array<i64: 2, 8, 32>}, {transform_indices = @transform_2, window_bounds = array<i64: 2, 8, 32>}, {transform_indices = @transform_3, window_bounds = array<i64: 2, 8, 32>}, {transform_indices = @transform_4, window_bounds = array<i64: 2, 8, 8>}]} {
    %c0 = arith.constant 0 : index
    %c0_0 = arith.constant 0 : index
    %c0_1 = arith.constant 0 : index
    %0 = vector.load %arg2[%c0, %c0_0, %c0_1] : memref<2x8x32xf32, #tpu.memory_space<vmem>>, vector<2x8x32xf32>
    %cst = arith.constant 0.176776692 : f32
    %1 = vector.broadcast %cst : f32 to vector<2x8x32xf32>
    %2 = arith.mulf %0, %1 : vector<2x8x32xf32>
    %c0_2 = arith.constant 0 : index
    %c0_3 = arith.constant 0 : index
    %c0_4 = arith.constant 0 : index
    %3 = vector.load %arg3[%c0_2, %c0_3, %c0_4] : memref<2x8x32xf32, #tpu.memory_space<vmem>>, vector<2x8x32xf32>
    %cst_5 = arith.constant dense<0.000000e+00> : vector<2x8x8xf32>
    %4 = tpu.matmul %2, %3, %cst_5 {dimension_numbers = #tpu.dot_dimension_numbers<[2], [2], [1], [1], [0, 0, 0, 1, 1, 1], [0], [0]>} : vector<2x8x32xf32>, vector<2x8x32xf32>, vector<2x8x8xf32> -> vector<2x8x8xf32>
    %cst_6 = arith.constant dense<0xFF800000> : vector<2x8xf32>
    %5 = vector.multi_reduction <maximumf>, %4, %cst_6 [2] : vector<2x8x8xf32> to vector<2x8xf32>
    %6 = vector.shape_cast %5 : vector<2x8xf32> to vector<2x8x1xf32>
    %7 = vector.broadcast %6 : vector<2x8x1xf32> to vector<2x8x8xf32>
    %8 = arith.subf %4, %7 : vector<2x8x8xf32>
    %9 = math.exp %8 : vector<2x8x8xf32>
    %cst_7 = arith.constant dense<0.000000e+00> : vector<2x8xf32>
    %10 = vector.multi_reduction <add>, %9, %cst_7 [2] : vector<2x8x8xf32> to vector<2x8xf32>
    %11 = vector.shape_cast %10 : vector<2x8xf32> to vector<2x8x1xf32>
    %12 = tpu.reciprocal %11 {approx = true} : vector<2x8x1xf32> -> vector<2x8x1xf32>
    %13 = arith.mulf %11, %12 : vector<2x8x1xf32>
    %cst_8 = arith.constant 2.000000e+00 : f32
    %14 = vector.broadcast %cst_8 : f32 to vector<2x8x1xf32>
    %15 = arith.subf %14, %13 : vector<2x8x1xf32>
    %16 = arith.mulf %12, %15 : vector<2x8x1xf32>
    %17 = vector.broadcast %16 : vector<2x8x1xf32> to vector<2x8x8xf32>
    %18 = arith.mulf %9, %17 : vector<2x8x8xf32>
    %c0_9 = arith.constant 0 : index
    %c0_10 = arith.constant 0 : index
    %c0_11 = arith.constant 0 : index
    %19 = vector.load %arg4[%c0_9, %c0_10, %c0_11] : memref<2x8x32xf32, #tpu.memory_space<vmem>>, vector<2x8x32xf32>
    %c0_12 = arith.constant 0 : index
    %c0_13 = arith.constant 0 : index
    %c0_14 = arith.constant 0 : index
    %20 = vector.load %arg6[%c0_12, %c0_13, %c0_14] : memref<2x8x8xf32, #tpu.memory_space<vmem>>, vector<2x8x8xf32>
    tpu.vector_store %arg6[%c0_12, %c0_13, %c0_14], %18 {strides = array<i32>} : memref<2x8x8xf32, #tpu.memory_space<vmem>>, vector<2x8x8xf32>,
    %cst_15 = arith.constant dense<0.000000e+00> : vector<2x8x32xf32>
    %21 = tpu.matmul %18, %19, %cst_15 {dimension_numbers = #tpu.dot_dimension_numbers<[2], [1], [1], [2], [0, 0, 0, 1, 1, 2], [0], [0]>} : vector<2x8x8xf32>, vector<2x8x32xf32>, vector<2x8x32xf32> -> vector<2x8x32xf32>
    %c0_16 = arith.constant 0 : index
    %c0_17 = arith.constant 0 : index
    %c0_18 = arith.constant 0 : index
    %22 = vector.load %arg5[%c0_16, %c0_17, %c0_18] : memref<2x8x32xf32, #tpu.memory_space<vmem>>, vector<2x8x32xf32>
    tpu.vector_store %arg5[%c0_16, %c0_17, %c0_18], %21 {strides = array<i32>} : memref<2x8x32xf32, #tpu.memory_space<vmem>>, vector<2x8x32xf32>,
    return
  }
  func.func @transform_0(%arg0: i32, %arg1: i32) -> (i32, i32, i32) {
    %c0_i32 = arith.constant 0 : i32
    %c0_i32_0 = arith.constant 0 : i32
    return %arg0, %arg1, %c0_i32 : i32, i32, i32
  }
  func.func @transform_1(%arg0: i32, %arg1: i32) -> (i32, i32, i32) {
    %c0_i32 = arith.constant 0 : i32
    %c0_i32_0 = arith.constant 0 : i32
    %c0_i32_1 = arith.constant 0 : i32
    return %arg0, %c0_i32, %c0_i32_0 : i32, i32, i32
  }
  func.func @transform_2(%arg0: i32, %arg1: i32) -> (i32, i32, i32) {
    %c0_i32 = arith.constant 0 : i32
    %c0_i32_0 = arith.constant 0 : i32
    %c0_i32_1 = arith.constant 0 : i32
    return %arg0, %c0_i32, %c0_i32_0 : i32, i32, i32
  }
  func.func @transform_3(%arg0: i32, %arg1: i32) -> (i32, i32, i32) {
    %c0_i32 = arith.constant 0 : i32
    %c0_i32_0 = arith.constant 0 : i32
    return %arg0, %arg1, %c0_i32 : i32, i32, i32
  }
  func.func @transform_4(%arg0: i32, %arg1: i32) -> (i32, i32, i32) {
    %c0_i32 = arith.constant 0 : i32
    %c0_i32_0 = arith.constant 0 : i32
    return %arg0, %arg1, %c0_i32 : i32, i32, i32
  }
}

</mosaic_0001>

<bundles_post_ra>
// kernel: tpu_custom_call.1
= control target key start
LH: loop header
LB: loop body
LE: loop exit
PB: predicated region body
PF: predicated region fallthrough
CT: control target
= control target key end

     0   :  { %10 = vsyncpa [#allocation3], 0  ;;  %s674_s0 = inlined_call_operand.hbm [shape: f32[2,8,32], index: 0, kind: input, shape index: {}]   ;;  %s675_s1 = inlined_call_operand.hbm [shape: f32[2,8,32], index: 1, kind: input, shape index: {}]   ;;  %s676_s2 = inlined_call_operand.hbm [shape: f32[2,8,32], index: 2, kind: input, shape index: {}]   ;;  %s677_s3 = inlined_call_operand.hbm [shape: f32[2,8,32], index: 3, kind: output, shape index: {0}]   ;;  %s678_s4 = inlined_call_operand.hbm [shape: f32[2,8,8], index: 4, kind: output, shape index: {1}]  }
   0x1   :  { %11 = vsyncpa [#allocation6], 0 }
   0x2   :  { %12 = vsyncpa [#allocation4], 0 }
   0x3   :  { %13 = vsyncpa [#allocation10], 0  ;;  %s592_s15 = smov [#allocation5]   ;;  %s593_s17 = smov [#allocation2]  }
   0x4   :  { %s31_s16 = sshll.u32 %s592_s15, 4  ;;  %s19_s18 = sshll.u32 %s593_s17, 4  ;;  %s32_s16 = int_to_ptr.vmem [resolvable:$true] %s31_s16  ;;  %s20_s18 = int_to_ptr.vmem [resolvable:$true] %s19_s18 }
   0x5   :  { %s492_s19 = scalar_lea.vmem %s32_s16, 256  ;;  %p497_p1 = scmp.lt.s32.totalorder %s32_s16, %s32_s16 }
   0x6   :  { %p493_p0 = scmp.ne.s32.totalorder %s32_s16, %s492_s19  ;;  %p498_p2 = scmp.lt.s32.totalorder %s492_s19, %s492_s19 }
   0x8   :  { %p499_p3 = por %p498_p2, %p497_p1 }
   0xa   :  { %p500_p4 = pnand %p499_p3, %p493_p0 }
   0xc   :  { %503 = shalt.err (!%p500_p4)
}
   0xd   :  { %s594_s20 = smov 128   ;;  %s595_s21 = smov 8  }
   0xe   :  { %37 = dma.hbm_to_vmem [thread:$0]  %s675_s1, 256, %s32_s16, [#allocation6], %s594_s20, %s594_s20, %s595_s21  }
   0xf   :  { %s512_s24 = scalar_lea.vmem %s20_s18, 256  ;;  %p517_p6 = scmp.lt.s32.totalorder %s20_s18, %s20_s18 }
  0x10   :  { %p513_p5 = scmp.ne.s32.totalorder %s20_s18, %s512_s24  ;;  %p518_p7 = scmp.lt.s32.totalorder %s512_s24, %s512_s24 }
  0x12   :  { %p519_p8 = por %p518_p7, %p517_p6 }
  0x14   :  { %p520_p9 = pnand %p519_p8, %p513_p5 }
  0x16   :  { %523 = shalt.err (!%p520_p9)
}
  0x17   :  { %25 = dma.hbm_to_vmem [thread:$0]  %s674_s0, 256, %s20_s18, [#allocation3], %s594_s20, %s594_s20, %s595_s21  }
  0x18   :  { %s596_s27 = smov [#allocation7]  }
  0x19   :  { %s43_s28 = sshll.u32 %s596_s27, 4  ;;  %s44_s28 = int_to_ptr.vmem [resolvable:$true] %s43_s28 }
  0x1a   :  { %s532_s29 = scalar_lea.vmem %s44_s28, 256  ;;  %p537_p11 = scmp.lt.s32.totalorder %s44_s28, %s44_s28 }
  0x1b   :  { %p533_p10 = scmp.ne.s32.totalorder %s44_s28, %s532_s29  ;;  %p538_p12 = scmp.lt.s32.totalorder %s532_s29, %s532_s29 }
  0x1d   :  { %p539_p13 = por %p538_p12, %p537_p11 }
  0x1f   :  { %p540_p0 = pnand %p539_p13, %p533_p10 }
  0x21   :  { %543 = shalt.err (!%p540_p0)
}
  0x22   :  { %49 = dma.hbm_to_vmem [thread:$0]  %s676_s2, 256, %s44_s28, [#allocation6], %s594_s20, %s594_s20, %s595_s21  }
  0x23   :  { %584 = dma.done.wait [#allocation3], 256  }
  0x24   :  { %585 = vsyncadd [#allocation3], 4294967040 }
  0x25   :  { %586 = dma.done.wait [#allocation6], 512  }
  0x26   :  { %587 = vsyncadd [#allocation6], 4294966784  ;;  %v597_v0 = vmov 0.0   ;;  %vm598_vm0 = vmmov 0   ;;  %vm65_vm1 = vcmask 261120   ;;  %v63_v1 = vld [vmem:[#allocation5] sm:$0xff] }
  0x27   :  { %447 = vmatprep.subr.mxu0 %v597_v0  ;;  %452 = vmatprep.subr.mxu1 %v597_v0  ;;  %v64_v2 = vld [vmem:[#allocation5 + $0x8] sm:$0xff]  ;;  %v59_v3 = vld [vmem:[#allocation2] sm:$0xff]  ;;  %v60_v5 = vld [vmem:[#allocation2 + $0x8] sm:$0xff]  ;;  %vm218_vm2 = vcmask 64512   ;;  %s599_s0 = smov [#allocation9]  }
  0x28   :  { %449 = vmatprep.mubr.msk.f32.mxu0 %vm598_vm0, %v597_v0  ;;  %454 = vmatprep.mubr.msk.f32.mxu1 %vm598_vm0, %v597_v0  ;;  %v61_v4 = vmul.f32 0.17677669, %v59_v3  ;;  %v62_v6 = vmul.f32 0.17677669, %v60_v5  ;;  %v247_v23 = vld [vmem:[#allocation7] sm:$0xff]  ;;  %v248_v24 = vld [vmem:[#allocation7 + $0x8] sm:$0xff] }
  0x29   :  { %448 = vmatpush3.xpose.msk.msra.mxu0 %vm65_vm1, %v63_v1  ;;  %453 = vmatpush3.xpose.msk.msra.mxu1 %vm65_vm1, %v64_v2  ;;  %s416_s2 = sshll.u32 %s599_s0, 4  ;;  %s417_s2 = int_to_ptr.vmem [resolvable:$true] %s416_s2 }
  0x2a   :  { %457 = vmatprep.subr.mxu0 %v597_v0  ;;  %462 = vmatprep.subr.mxu1 %v597_v0  ;;  %s544_s5 = scalar_lea.vmem %s417_s2, 256  ;;  %p549_p2 = scmp.lt.s32.totalorder %s417_s2, %s417_s2 }
  0x2b   :  { %p545_p1 = scmp.ne.s32.totalorder %s417_s2, %s544_s5  ;;  %p550_p3 = scmp.lt.s32.totalorder %s544_s5, %s544_s5 }
  0x2c   :  { %450 = vmatmul.mubr.msk.f32.vlgmr.msra.gmra.mxu0 %vm65_vm1, %v61_v4  ;;  %455 = vmatmul.mubr.msk.f32.vlgmr.msra.gmra.mxu1 %vm65_vm1, %v62_v6 }
  0x2d   :  { %459 = vmatprep.mubr.msk.f32.mxu0 %vm598_vm0, %v597_v0  ;;  %464 = vmatprep.mubr.msk.f32.mxu1 %vm598_vm0, %v597_v0  ;;  %p551_p4 = por %p550_p3, %p549_p2 }
  0x2e   :  { %458 = vmatpush3.msra.mxu0 %v247_v23  ;;  %463 = vmatpush3.msra.mxu1 %v248_v24 }
  0x2f   :  { %p552_p5 = pnand %p551_p4, %p545_p1 }
  0xec   :  { %v138_v7 = vpop.f32.mrf.mxu0  ;;  %v214_v8 = vpop.f32.mrf.mxu1 }
  0xed   :  { %v219_v9 = vsel %vm218_vm2, %v138_v7, -inf  ;;  %v222_v12 = vsel %vm218_vm2, %v214_v8, -inf }
  0xee   :  { %220 = vmax.xlane.f32.xlu0 %v219_v9  ;;  %v451_v10 = vpop.f32.mrf.mxu0  ;;  %v456_v11 = vpop.f32.mrf.mxu1 }
  0xf2   :  { %223 = vmax.xlane.f32.xlu0 %v222_v12 }
 0x177   :  { %v221_v13 = vpop.xlane.xlu0 %220 }
 0x178   :  { %v225_v14 = vsub.f32 %v138_v7, %v221_v13 }
 0x17a   :  { %v227_v15 = vmul.f32 1.442695, %v225_v14 }
 0x17b   :  { %v224_v16 = vpop.xlane.xlu0 %223 }
 0x17c   :  { %476 = vpow2.f32 %v227_v15  ;;  %v226_v17 = vsub.f32 %v214_v8, %v224_v16 }
 0x17e   :  { %v229_v18 = vmul.f32 1.442695, %v226_v17 }
 0x180   :  { %478 = vpow2.f32 %v229_v18 }
 0x189   :  { %v477_v19 = vpop.eup %476 }
 0x18a   :  { %v231_v20 = vsel %vm218_vm2, %v477_v19, 0.0 }
 0x18b   :  { %232 = vadd.xlane.f32.xlu1 %v231_v20 }
 0x18d   :  { %v479_v21 = vpop.eup %478 }
 0x18e   :  { %v234_v22 = vsel %vm218_vm2, %v479_v21, 0.0 }
 0x18f   :  { %235 = vadd.xlane.f32.xlu1 %v234_v22 }
 0x214   :  { %v233_v25 = vpop.xlane.xlu1 %232 }
 0x215   :  { %480 = vrcp.f32 %v233_v25 }
 0x218   :  { %v236_v26 = vpop.xlane.xlu1 %235 }
 0x219   :  { %482 = vrcp.f32 %v236_v26 }
 0x222   :  { %v481_v27 = vpop.eup %480 }
 0x223   :  { %v239_v28 = vmul.f32 %v481_v27, %v233_v25 }
 0x225   :  { %v241_v29 = vsub.f32 2.0, %v239_v28 }
 0x226   :  { %v483_v30 = vpop.eup %482 }
 0x227   :  { %v243_v31 = vmul.f32 %v481_v27, %v241_v29  ;;  %v240_v32 = vmul.f32 %v483_v30, %v236_v26 }
 0x229   :  { %v245_v33 = vmul.f32 %v477_v19, %v243_v31  ;;  %v242_v34 = vsub.f32 2.0, %v240_v32 }
 0x22b   :  { %249 = vst.msk [vmem:[#allocation9] sm:$0xff] %vm218_vm2, %v245_v33  ;;  %v244_v35 = vmul.f32 %v483_v30, %v242_v34  ;;  %460 = vmatmul.mubr.msk.f32.vlgmr.msra.gmra.mxu0 %vm218_vm2, %v245_v33 }
 0x22d   :  { %v246_v36 = vmul.f32 %v479_v21, %v244_v35 }
 0x22f   :  { %250 = vst.msk [vmem:[#allocation9 + $0x8] sm:$0xff] %vm218_vm2, %v246_v36  ;;  %465 = vmatmul.mubr.msk.f32.vlgmr.msra.gmra.mxu1 %vm218_vm2, %v246_v36 }
 0x230   :  { %555 = shalt.err (!%p552_p5)
}
 0x231   :  { %422 = dma.vmem_to_hbm [thread:$0]  %s417_s2, 256, %s678_s4, [#allocation10], %s594_s20, %s594_s20, %s595_s21  }
 0x232   :  { %s600_s8 = smov [#allocation8]  }
 0x233   :  { %s404_s9 = sshll.u32 %s600_s8, 4  ;;  %s405_s9 = int_to_ptr.vmem [resolvable:$true] %s404_s9 }
 0x234   :  { %s564_s10 = scalar_lea.vmem %s405_s9, 256  ;;  %p569_p7 = scmp.lt.s32.totalorder %s405_s9, %s405_s9 }
 0x235   :  { %p565_p6 = scmp.ne.s32.totalorder %s405_s9, %s564_s10  ;;  %p570_p8 = scmp.lt.s32.totalorder %s564_s10, %s564_s10 }
 0x237   :  { %p571_p9 = por %p570_p8, %p569_p7 }
 0x239   :  { %p572_p10 = pnand %p571_p9, %p565_p6 }
 0x2eb   :  { %v320_v37 = vpop.f32.mrf.mxu0 }
 0x2ec   :  { %397 = vst.msk [vmem:[#allocation8] sm:$0xff] %vm65_vm1, %v320_v37 }
 0x2ed   :  { %v461_v38 = vpop.f32.mrf.mxu0 }
 0x2ef   :  { %v393_v39 = vpop.f32.mrf.mxu1 }
 0x2f0   :  { %398 = vst.msk [vmem:[#allocation8 + $0x8] sm:$0xff] %vm65_vm1, %v393_v39 }
 0x2f1   :  { %v466_v40 = vpop.f32.mrf.mxu1 }
 0x2f2   :  { %575 = shalt.err (!%p572_p10)
}
 0x2f3   :  { %410 = dma.vmem_to_hbm [thread:$0]  %s405_s9, 256, %s677_s3, [#allocation4], %s594_s20, %s594_s20, %s595_s21  }
 0x2f4   :  { %588 = dma.done.wait [#allocation4], 256  }
 0x2f5   :  { %589 = vsyncadd [#allocation4], 4294967040 }
 0x2f6   :  { %590 = dma.done.wait [#allocation10], 256  }
 0x2f7   :  { %591 = vsyncadd [#allocation10], 4294967040 }
 0x2f8   :  { %429 = vsyncpa [#allocation3], 1 }
 0x2f9   :  { %430 = vsyncpa [#allocation6], 1 }
 0x2fa   :  { %431 = vsyncpa [#allocation4], 1 }
 0x2fb   :  { %432 = vsyncpa [#allocation10], 1 }

</bundles_post_ra>
